<compile_context>
chip_gen: v7x
topology: tpu7x:2x2x1
jax: 0.10.0
libtpu: 0.0.40
codegen_flags: <defaults>
</compile_context>

<pallas_src>
import math
import numpy as np
import jax
import jax.numpy as jnp
from jax.experimental import pallas as pl
from jax.experimental.pallas import tpu as pltpu

# ---- model hyper-parameters (small, consistent with the module) ----
BATCH = 2
SEQ = 8
D_MODEL = 32
NUM_HEADS = 4
D_FF = 64
D_K = D_MODEL // NUM_HEADS
EPS = 1e-5  # nn.LayerNorm default

# bf16 MXU inputs (f32 accumulation). Set to jnp.float32 for bit-closer parity with
# the f32 PyTorch reference (bf16 introduces ~1e-2 relative drift).
MATMUL_INPUT_DTYPE = jnp.bfloat16

# Constants-slab row layout (f32, 128 lanes wide).
ROW_B_QKV, ROW_B_O, ROW_B_FF1, ROW_B_FF2 = 0, 1, 2, 3
ROW_G1, ROW_BE1, ROW_G2, ROW_BE2 = 4, 5, 6, 7
ROW_HEAD_MASK = 8  # followed by H*B*S rows of head mask, then H*B*S rows of attn mask


def _layer_norm(x, gamma, beta):
    # PyTorch LayerNorm: biased variance over last dim, eps inside sqrt.
    mean = jnp.mean(x, axis=-1, keepdims=True)
    var = jnp.mean((x - mean) ** 2, axis=-1, keepdims=True)
    return (x - mean) * jax.lax.rsqrt(var + EPS) * gamma + beta


def _mm(a, b):
    # a @ b on the MXU, bf16 inputs, f32 accumulation.
    return jax.lax.dot_general(
        a.astype(MATMUL_INPUT_DTYPE), b.astype(MATMUL_INPUT_DTYPE),
        dimension_numbers=(((1,), (0,)), ((), ())),
        preferred_element_type=jnp.float32)


def _mm_nt(a, b):
    # a @ b.T with the transpose folded into the MXU operand feed (no XLU transpose).
    return jax.lax.dot_general(
        a.astype(MATMUL_INPUT_DTYPE), b.astype(MATMUL_INPUT_DTYPE),
        dimension_numbers=(((1,), (1,)), ((), ())),
        preferred_element_type=jnp.float32)


def make_transformer_block_kernel(B, S, D, H, DK, DFF):
    BS = B * S
    HBS = H * BS
    # Packed weight-slab row offsets (bf16; all multiples of 16 -> clean bf16 tiles).
    R_QKV, R_O, R_F1, R_F2 = 0, D, 2 * D, 3 * D
    W_ROWS = 3 * D + DFF

    def kernel(x_ref, w_ref, c_ref, out_ref):
        x = x_ref[...].astype(jnp.float32)                 # (BS, D)

        vecs = c_ref[0:8, :]                               # (8,128) f32 small params
        b_qkv = vecs[ROW_B_QKV:ROW_B_QKV + 1, :3 * D]      # (1, 3D)
        b_o   = vecs[ROW_B_O:ROW_B_O + 1, :D]
        b_f1  = vecs[ROW_B_FF1:ROW_B_FF1 + 1, :DFF]
        b_f2  = vecs[ROW_B_FF2:ROW_B_FF2 + 1, :D]
        g1    = vecs[ROW_G1:ROW_G1 + 1, :D]
        be1   = vecs[ROW_BE1:ROW_BE1 + 1, :D]
        g2    = vecs[ROW_G2:ROW_G2 + 1, :D]
        be2   = vecs[ROW_BE2:ROW_BE2 + 1, :D]

        # Precomputed masks (host side): head-block 1/0 mask and batch-block
        # additive (0 / -1e30) attention mask, heads stacked on sublanes.
        head_mask = c_ref[ROW_HEAD_MASK:ROW_HEAD_MASK + HBS, 0:D]          # (HBS, D)
        attn_mask = c_ref[ROW_HEAD_MASK + HBS:ROW_HEAD_MASK + 2 * HBS, 0:BS]  # (HBS, BS)

        # --- fused Q/K/V projection: one lane-dense 128-wide matmul ---
        qkv = _mm(x, w_ref[R_QKV:R_QKV + D, :])            # (BS, 128) f32
        qkv = qkv[:, :3 * D] + b_qkv                       # (BS, 3D)
        q = qkv[:, 0:D]            # 1/sqrt(DK) already folded into Wq / b_q
        k = qkv[:, D:2 * D]
        v = qkv[:, 2 * D:3 * D]

        # --- attention: heads stacked on the sublane axis, 2 MXU launches total ---
        # Q_big[h*BS + i, :] = q[i, :] with columns outside head h zeroed.
        q_big = jnp.concatenate([q] * H, axis=0) * head_mask      # (HBS, D)
        scores = _mm_nt(q_big, k) + attn_mask                      # (HBS, BS)
        scores = scores - jnp.max(scores, axis=-1, keepdims=True)
        p = jnp.exp(scores)
        p = p * pl.reciprocal(jnp.sum(p, axis=-1, keepdims=True), approx=True)
        o_big = _mm(p, v) * head_mask                              # (HBS, D)
        # Recover the concatenated per-head output without a lane-axis concat.
        attn_cat = o_big[0:BS]
        for h in range(1, H):                                      # static, H=4
            attn_cat = attn_cat + o_big[h * BS:(h + 1) * BS]       # (BS, D)

        attn_out = _mm(attn_cat, w_ref[R_O:R_O + D, :])[:, :D] + b_o

        # --- residual + LayerNorm 1 (dropout = identity in eval mode) ---
        # TODO(synk): nn.Dropout(0.1) has no effect at inference; not implemented.
        x1 = _layer_norm(x + attn_out, g1, be1)

        # --- feed-forward: Linear -> exact (erf) GELU -> Linear ---
        h1 = _mm(x1, w_ref[R_F1:R_F1 + D, :])[:, :DFF] + b_f1
        h1 = 0.5 * h1 * (1.0 + jax.lax.erf(h1 * jnp.float32(0.7071067811865476)))
        ff = _mm(h1, w_ref[R_F2:R_F2 + DFF, :])[:, :D] + b_f2

        # --- residual + LayerNorm 2 ---
        out = _layer_norm(x1 + ff, g2, be2)
        out_ref[...] = out.astype(out_ref.dtype)

    return kernel


def transformer_block(x, params):
    """x: (B, S, D) float32; params: (w_packed_bf16, consts_f32)."""
    B, S, D = x.shape
    w_packed, consts = params

    kernel = make_transformer_block_kernel(B, S, D, NUM_HEADS, D_K, D_FF)
    x2 = x.reshape(B * S, D)   # fold batch into the matmul M dimension

    vmem_spec = pl.BlockSpec(memory_space=pltpu.MemorySpace.VMEM)
    out2 = pl.pallas_call(
        kernel,
        out_shape=jax.ShapeDtypeStruct((B * S, D), x.dtype),
        in_specs=[vmem_spec, vmem_spec, vmem_spec],
        out_specs=vmem_spec,
    )(x2, w_packed, consts)
    return out2.reshape(B, S, D)


def xavier_uniform(key, fan_in, fan_out):
    # matches nn.init.xavier_uniform_ applied to a (fan_out, fan_in) torch weight,
    # returned here already transposed to (fan_in, fan_out) for x @ W.
    bound = (6.0 / (fan_in + fan_out)) ** 0.5
    return jax.random.uniform(key, (fan_in, fan_out), jnp.float32, -bound, bound)


def init_params(key):
    ks = jax.random.split(key, 6)
    scale = 1.0 / math.sqrt(D_K)
    wq = xavier_uniform(ks[0], D_MODEL, D_MODEL) * scale   # 1/sqrt(d_k) folded in
    wk = xavier_uniform(ks[1], D_MODEL, D_MODEL)
    wv = xavier_uniform(ks[2], D_MODEL, D_MODEL)
    wo = xavier_uniform(ks[3], D_MODEL, D_MODEL)
    w1 = xavier_uniform(ks[4], D_MODEL, D_FF)
    w2 = xavier_uniform(ks[5], D_FF, D_MODEL)
    wqkv = jnp.concatenate([wq, wk, wv], axis=1)           # (D, 3D) fused

    # --- packed bf16 weight slab: each weight zero-padded to 128 lanes, stacked ---
    W_ROWS = 3 * D_MODEL + D_FF                            # 160
    w_packed = jnp.zeros((W_ROWS, 128), jnp.float32)
    w_packed = w_packed.at[0:D_MODEL, 0:3 * D_MODEL].set(wqkv)
    w_packed = w_packed.at[D_MODEL:2 * D_MODEL, 0:D_MODEL].set(wo)
    w_packed = w_packed.at[2 * D_MODEL:3 * D_MODEL, 0:D_FF].set(w1)
    w_packed = w_packed.at[3 * D_MODEL:3 * D_MODEL + D_FF, 0:D_MODEL].set(w2)
    w_packed = w_packed.astype(jnp.bfloat16)

    # --- packed f32 constants slab: biases, LayerNorm params, masks ---
    BS = BATCH * SEQ
    HBS = NUM_HEADS * BS
    C_ROWS = ROW_HEAD_MASK + 2 * HBS                       # 8 + 64 + 64 = 136
    consts = np.zeros((C_ROWS, 128), np.float32)
    # all biases are zero (nn.init.zeros_); b_q would also carry the 1/sqrt(d_k)
    # scale if nonzero. LayerNorm gammas = 1, betas = 0.
    consts[ROW_G1, 0:D_MODEL] = 1.0
    consts[ROW_G2, 0:D_MODEL] = 1.0
    # head-block mask (HBS, D): 1 where column's head == row's head (row // BS).
    rows = np.arange(HBS)[:, None]
    cols = np.arange(D_MODEL)[None, :]
    head_mask = (cols // D_K == rows // BS).astype(np.float32)
    consts[ROW_HEAD_MASK:ROW_HEAD_MASK + HBS, 0:D_MODEL] = head_mask
    # batch-block additive attention mask (BS, BS) tiled over heads -> (HBS, BS).
    qi = np.arange(BS)[:, None]
    kj = np.arange(BS)[None, :]
    bmask = np.where(qi // SEQ == kj // SEQ, 0.0, -1e30).astype(np.float32)
    consts[ROW_HEAD_MASK + HBS:ROW_HEAD_MASK + 2 * HBS, 0:BS] = np.tile(
        bmask, (NUM_HEADS, 1))

    return (w_packed, jnp.asarray(consts))


if __name__ == "__main__":
    key = jax.random.PRNGKey(0)
    k_x, k_p = jax.random.split(key)
    x = jax.random.normal(k_x, (BATCH, SEQ, D_MODEL), jnp.float32)
    params = init_params(k_p)

    out = transformer_block(x, params)
    jax.block_until_ready(out)
    assert out.shape == (BATCH, SEQ, D_MODEL)
    assert bool(jnp.all(jnp.isfinite(out)))
    print("KERNEL_OK")
</pallas_src>

<mosaic_0001>
module attributes {stable_mosaic.version = 11 : i64} {
  func.func @kernel(%arg0: memref<16x32xf32, #tpu.memory_space<vmem>>, %arg1: memref<160x128xbf16, #tpu.memory_space<vmem>>, %arg2: memref<136x128xf32, #tpu.memory_space<vmem>>, %arg3: memref<16x32xf32, #tpu.memory_space<vmem>>) attributes {dimension_semantics = [], scalar_prefetch = 0 : i64, scratch_operands = 0 : i64, tpu.core_type = #tpu.core_type<tc>} {
    %c0 = arith.constant 0 : index
    %c0_0 = arith.constant 0 : index
    %0 = vector.load %arg0[%c0, %c0_0] : memref<16x32xf32, #tpu.memory_space<vmem>>, vector<16x32xf32>
    %c0_1 = arith.constant 0 : index
    %c0_2 = arith.constant 0 : index
    %1 = vector.load %arg2[%c0_1, %c0_2] : memref<136x128xf32, #tpu.memory_space<vmem>>, vector<8x128xf32>
    %2 = vector.extract_strided_slice %1 {offsets = [0, 0], sizes = [1, 96], strides = [1, 1]} : vector<8x128xf32> to vector<1x96xf32>
    %3 = vector.extract_strided_slice %1 {offsets = [1, 0], sizes = [1, 32], strides = [1, 1]} : vector<8x128xf32> to vector<1x32xf32>
    %4 = vector.extract_strided_slice %1 {offsets = [2, 0], sizes = [1, 64], strides = [1, 1]} : vector<8x128xf32> to vector<1x64xf32>
    %5 = vector.extract_strided_slice %1 {offsets = [3, 0], sizes = [1, 32], strides = [1, 1]} : vector<8x128xf32> to vector<1x32xf32>
    %6 = vector.extract_strided_slice %1 {offsets = [4, 0], sizes = [1, 32], strides = [1, 1]} : vector<8x128xf32> to vector<1x32xf32>
    %7 = vector.extract_strided_slice %1 {offsets = [5, 0], sizes = [1, 32], strides = [1, 1]} : vector<8x128xf32> to vector<1x32xf32>
    %8 = vector.extract_strided_slice %1 {offsets = [6, 0], sizes = [1, 32], strides = [1, 1]} : vector<8x128xf32> to vector<1x32xf32>
    %9 = vector.extract_strided_slice %1 {offsets = [7, 0], sizes = [1, 32], strides = [1, 1]} : vector<8x128xf32> to vector<1x32xf32>
    %c8 = arith.constant 8 : index
    %c0_3 = arith.constant 0 : index
    %10 = vector.load %arg2[%c8, %c0_3] : memref<136x128xf32, #tpu.memory_space<vmem>>, vector<64x32xf32>
    %c72 = arith.constant 72 : index
    %c0_4 = arith.constant 0 : index
    %11 = vector.load %arg2[%c72, %c0_4] : memref<136x128xf32, #tpu.memory_space<vmem>>, vector<64x16xf32>
    %c0_5 = arith.constant 0 : index
    %c0_6 = arith.constant 0 : index
    %12 = vector.load %arg1[%c0_5, %c0_6] : memref<160x128xbf16, #tpu.memory_space<vmem>>, vector<32x128xbf16>
    %13 = arith.truncf %0 : vector<16x32xf32> to vector<16x32xbf16>
    %cst = arith.constant dense<0.000000e+00> : vector<16x128xf32>
    %14 = tpu.matmul %13, %12, %cst {dimension_numbers = #tpu.dot_dimension_numbers<[1], [0], [0], [1], [0, 0, 1, 1], [], []>} : vector<16x32xbf16>, vector<32x128xbf16>, vector<16x128xf32> -> vector<16x128xf32>
    %15 = vector.extract_strided_slice %14 {offsets = [0, 0], sizes = [16, 96], strides = [1, 1]} : vector<16x128xf32> to vector<16x96xf32>
    %16 = vector.broadcast %2 : vector<1x96xf32> to vector<16x96xf32>
    %17 = arith.addf %15, %16 : vector<16x96xf32>
    %18 = vector.extract_strided_slice %17 {offsets = [0, 0], sizes = [16, 32], strides = [1, 1]} : vector<16x96xf32> to vector<16x32xf32>
    %19 = vector.extract_strided_slice %17 {offsets = [0, 32], sizes = [16, 32], strides = [1, 1]} : vector<16x96xf32> to vector<16x32xf32>
    %20 = vector.extract_strided_slice %17 {offsets = [0, 64], sizes = [16, 32], strides = [1, 1]} : vector<16x96xf32> to vector<16x32xf32>
    %21 = tpu.concatenate %18, %18, %18, %18 in 0 : vector<16x32xf32>, vector<16x32xf32>, vector<16x32xf32>, vector<16x32xf32> -> vector<64x32xf32>
    %22 = arith.mulf %21, %10 : vector<64x32xf32>
    %23 = arith.truncf %22 : vector<64x32xf32> to vector<64x32xbf16>
    %24 = arith.truncf %19 : vector<16x32xf32> to vector<16x32xbf16>
    %cst_7 = arith.constant dense<0.000000e+00> : vector<64x16xf32>
    %25 = tpu.matmul %23, %24, %cst_7 {dimension_numbers = #tpu.dot_dimension_numbers<[1], [1], [0], [0], [0, 0, 1, 0], [], []>} : vector<64x32xbf16>, vector<16x32xbf16>, vector<64x16xf32> -> vector<64x16xf32>
    %26 = arith.addf %25, %11 : vector<64x16xf32>
    %cst_8 = arith.constant dense<0xFF800000> : vector<64xf32>
    %27 = vector.multi_reduction <maximumf>, %26, %cst_8 [1] : vector<64x16xf32> to vector<64xf32>
    %28 = vector.shape_cast %27 : vector<64xf32> to vector<64x1xf32>
    %29 = vector.broadcast %28 : vector<64x1xf32> to vector<64x16xf32>
    %30 = arith.subf %26, %29 : vector<64x16xf32>
    %31 = math.exp %30 : vector<64x16xf32>
    %cst_9 = arith.constant dense<0.000000e+00> : vector<64xf32>
    %32 = vector.multi_reduction <add>, %31, %cst_9 [1] : vector<64x16xf32> to vector<64xf32>
    %33 = vector.shape_cast %32 : vector<64xf32> to vector<64x1xf32>
    %34 = tpu.reciprocal %33 {approx = true} : vector<64x1xf32> -> vector<64x1xf32>
    %35 = vector.broadcast %34 : vector<64x1xf32> to vector<64x16xf32>
    %36 = arith.mulf %31, %35 : vector<64x16xf32>
    %37 = arith.truncf %36 : vector<64x16xf32> to vector<64x16xbf16>
    %38 = arith.truncf %20 : vector<16x32xf32> to vector<16x32xbf16>
    %cst_10 = arith.constant dense<0.000000e+00> : vector<64x32xf32>
    %39 = tpu.matmul %37, %38, %cst_10 {dimension_numbers = #tpu.dot_dimension_numbers<[1], [0], [0], [1], [0, 0, 1, 1], [], []>} : vector<64x16xbf16>, vector<16x32xbf16>, vector<64x32xf32> -> vector<64x32xf32>
    %40 = arith.mulf %39, %10 : vector<64x32xf32>
    %41 = vector.extract_strided_slice %40 {offsets = [0, 0], sizes = [16, 32], strides = [1, 1]} : vector<64x32xf32> to vector<16x32xf32>
    %42 = vector.extract_strided_slice %40 {offsets = [16, 0], sizes = [16, 32], strides = [1, 1]} : vector<64x32xf32> to vector<16x32xf32>
    %43 = arith.addf %41, %42 : vector<16x32xf32>
    %44 = vector.extract_strided_slice %40 {offsets = [32, 0], sizes = [16, 32], strides = [1, 1]} : vector<64x32xf32> to vector<16x32xf32>
    %45 = arith.addf %43, %44 : vector<16x32xf32>
    %46 = vector.extract_strided_slice %40 {offsets = [48, 0], sizes = [16, 32], strides = [1, 1]} : vector<64x32xf32> to vector<16x32xf32>
    %47 = arith.addf %45, %46 : vector<16x32xf32>
    %c32 = arith.constant 32 : index
    %c0_11 = arith.constant 0 : index
    %48 = vector.load %arg1[%c32, %c0_11] : memref<160x128xbf16, #tpu.memory_space<vmem>>, vector<32x128xbf16>
    %49 = arith.truncf %47 : vector<16x32xf32> to vector<16x32xbf16>
    %cst_12 = arith.constant dense<0.000000e+00> : vector<16x128xf32>
    %50 = tpu.matmul %49, %48, %cst_12 {dimension_numbers = #tpu.dot_dimension_numbers<[1], [0], [0], [1], [0, 0, 1, 1], [], []>} : vector<16x32xbf16>, vector<32x128xbf16>, vector<16x128xf32> -> vector<16x128xf32>
    %51 = vector.extract_strided_slice %50 {offsets = [0, 0], sizes = [16, 32], strides = [1, 1]} : vector<16x128xf32> to vector<16x32xf32>
    %52 = vector.broadcast %3 : vector<1x32xf32> to vector<16x32xf32>
    %53 = arith.addf %51, %52 : vector<16x32xf32>
    %54 = arith.addf %0, %53 : vector<16x32xf32>
    %cst_13 = arith.constant dense<0.000000e+00> : vector<16xf32>
    %55 = vector.multi_reduction <add>, %54, %cst_13 [1] : vector<16x32xf32> to vector<16xf32>
    %56 = vector.shape_cast %55 : vector<16xf32> to vector<16x1xf32>
    %cst_14 = arith.constant 3.200000e+01 : f32
    %57 = vector.broadcast %cst_14 : f32 to vector<16x1xf32>
    %58 = arith.divf %56, %57 : vector<16x1xf32>
    %59 = vector.broadcast %58 : vector<16x1xf32> to vector<16x32xf32>
    %60 = arith.subf %54, %59 : vector<16x32xf32>
    %61 = arith.mulf %60, %60 : vector<16x32xf32>
    %cst_15 = arith.constant dense<0.000000e+00> : vector<16xf32>
    %62 = vector.multi_reduction <add>, %61, %cst_15 [1] : vector<16x32xf32> to vector<16xf32>
    %63 = vector.shape_cast %62 : vector<16xf32> to vector<16x1xf32>
    %cst_16 = arith.constant 3.200000e+01 : f32
    %64 = vector.broadcast %cst_16 : f32 to vector<16x1xf32>
    %65 = arith.divf %63, %64 : vector<16x1xf32>
    %66 = vector.broadcast %58 : vector<16x1xf32> to vector<16x32xf32>
    %67 = arith.subf %54, %66 : vector<16x32xf32>
    %cst_17 = arith.constant 9.99999974E-6 : f32
    %68 = vector.broadcast %cst_17 : f32 to vector<16x1xf32>
    %69 = arith.addf %65, %68 : vector<16x1xf32>
    %70 = math.rsqrt %69 : vector<16x1xf32>
    %71 = vector.broadcast %70 : vector<16x1xf32> to vector<16x32xf32>
    %72 = arith.mulf %67, %71 : vector<16x32xf32>
    %73 = vector.broadcast %6 : vector<1x32xf32> to vector<16x32xf32>
    %74 = arith.mulf %72, %73 : vector<16x32xf32>
    %75 = vector.broadcast %7 : vector<1x32xf32> to vector<16x32xf32>
    %76 = arith.addf %74, %75 : vector<16x32xf32>
    %c64 = arith.constant 64 : index
    %c0_18 = arith.constant 0 : index
    %77 = vector.load %arg1[%c64, %c0_18] : memref<160x128xbf16, #tpu.memory_space<vmem>>, vector<32x128xbf16>
    %78 = arith.truncf %76 : vector<16x32xf32> to vector<16x32xbf16>
    %cst_19 = arith.constant dense<0.000000e+00> : vector<16x128xf32>
    %79 = tpu.matmul %78, %77, %cst_19 {dimension_numbers = #tpu.dot_dimension_numbers<[1], [0], [0], [1], [0, 0, 1, 1], [], []>} : vector<16x32xbf16>, vector<32x128xbf16>, vector<16x128xf32> -> vector<16x128xf32>
    %80 = vector.extract_strided_slice %79 {offsets = [0, 0], sizes = [16, 64], strides = [1, 1]} : vector<16x128xf32> to vector<16x64xf32>
    %81 = vector.broadcast %4 : vector<1x64xf32> to vector<16x64xf32>
    %82 = arith.addf %80, %81 : vector<16x64xf32>
    %cst_20 = arith.constant 5.000000e-01 : f32
    %83 = vector.broadcast %cst_20 : f32 to vector<16x64xf32>
    %84 = arith.mulf %83, %82 : vector<16x64xf32>
    %cst_21 = arith.constant 0.707106769 : f32
    %85 = vector.broadcast %cst_21 : f32 to vector<16x64xf32>
    %86 = arith.mulf %82, %85 : vector<16x64xf32>
    %87 = math.erf %86 : vector<16x64xf32>
    %cst_22 = arith.constant 1.000000e+00 : f32
    %88 = vector.broadcast %cst_22 : f32 to vector<16x64xf32>
    %89 = arith.addf %88, %87 : vector<16x64xf32>
    %90 = arith.mulf %84, %89 : vector<16x64xf32>
    %c96 = arith.constant 96 : index
    %c0_23 = arith.constant 0 : index
    %91 = vector.load %arg1[%c96, %c0_23] : memref<160x128xbf16, #tpu.memory_space<vmem>>, vector<64x128xbf16>
    %92 = arith.truncf %90 : vector<16x64xf32> to vector<16x64xbf16>
    %cst_24 = arith.constant dense<0.000000e+00> : vector<16x128xf32>
    %93 = tpu.matmul %92, %91, %cst_24 {dimension_numbers = #tpu.dot_dimension_numbers<[1], [0], [0], [1], [0, 0, 1, 1], [], []>} : vector<16x64xbf16>, vector<64x128xbf16>, vector<16x128xf32> -> vector<16x128xf32>
    %94 = vector.extract_strided_slice %93 {offsets = [0, 0], sizes = [16, 32], strides = [1, 1]} : vector<16x128xf32> to vector<16x32xf32>
    %95 = vector.broadcast %5 : vector<1x32xf32> to vector<16x32xf32>
    %96 = arith.addf %94, %95 : vector<16x32xf32>
    %97 = arith.addf %76, %96 : vector<16x32xf32>
    %cst_25 = arith.constant dense<0.000000e+00> : vector<16xf32>
    %98 = vector.multi_reduction <add>, %97, %cst_25 [1] : vector<16x32xf32> to vector<16xf32>
    %99 = vector.shape_cast %98 : vector<16xf32> to vector<16x1xf32>
    %cst_26 = arith.constant 3.200000e+01 : f32
    %100 = vector.broadcast %cst_26 : f32 to vector<16x1xf32>
    %101 = arith.divf %99, %100 : vector<16x1xf32>
    %102 = vector.broadcast %101 : vector<16x1xf32> to vector<16x32xf32>
    %103 = arith.subf %97, %102 : vector<16x32xf32>
    %104 = arith.mulf %103, %103 : vector<16x32xf32>
    %cst_27 = arith.constant dense<0.000000e+00> : vector<16xf32>
    %105 = vector.multi_reduction <add>, %104, %cst_27 [1] : vector<16x32xf32> to vector<16xf32>
    %106 = vector.shape_cast %105 : vector<16xf32> to vector<16x1xf32>
    %cst_28 = arith.constant 3.200000e+01 : f32
    %107 = vector.broadcast %cst_28 : f32 to vector<16x1xf32>
    %108 = arith.divf %106, %107 : vector<16x1xf32>
    %109 = vector.broadcast %101 : vector<16x1xf32> to vector<16x32xf32>
    %110 = arith.subf %97, %109 : vector<16x32xf32>
    %cst_29 = arith.constant 9.99999974E-6 : f32
    %111 = vector.broadcast %cst_29 : f32 to vector<16x1xf32>
    %112 = arith.addf %108, %111 : vector<16x1xf32>
    %113 = math.rsqrt %112 : vector<16x1xf32>
    %114 = vector.broadcast %113 : vector<16x1xf32> to vector<16x32xf32>
    %115 = arith.mulf %110, %114 : vector<16x32xf32>
    %116 = vector.broadcast %8 : vector<1x32xf32> to vector<16x32xf32>
    %117 = arith.mulf %115, %116 : vector<16x32xf32>
    %118 = vector.broadcast %9 : vector<1x32xf32> to vector<16x32xf32>
    %119 = arith.addf %117, %118 : vector<16x32xf32>
    %c0_30 = arith.constant 0 : index
    %c0_31 = arith.constant 0 : index
    %120 = vector.load %arg3[%c0_30, %c0_31] : memref<16x32xf32, #tpu.memory_space<vmem>>, vector<16x32xf32>
    tpu.vector_store %arg3[%c0_30, %c0_31], %119 {strides = array<i32>} : memref<16x32xf32, #tpu.memory_space<vmem>>, vector<16x32xf32>,
    return
  }
}

</mosaic_0001>

<bundles_post_ra>
// kernel: tpu_custom_call.1
= control target key start
LH: loop header
LB: loop body
LE: loop exit
PB: predicated region body
PF: predicated region fallthrough
CT: control target
= control target key end

     0   :  { %8 = vsyncpa [#allocation3], 0  ;;  %s1234_s0 = inlined_call_operand.hbm [shape: f32[16,32], index: 0, kind: input, shape index: {}]   ;;  %s1235_s1 = inlined_call_operand.hbm [shape: bf16[160,128], index: 1, kind: input, shape index: {}]   ;;  %s1236_s2 = inlined_call_operand.hbm [shape: f32[136,128], index: 2, kind: input, shape index: {}]   ;;  %s1237_s3 = inlined_call_operand.hbm [shape: f32[16,32], index: 3, kind: output, shape index: {}]  }
   0x1   :  { %9 = vsyncpa [#allocation6], 0 }
   0x2   :  { %10 = vsyncpa [#allocation4], 0  ;;  %s1018_s12 = smov [#allocation5]   ;;  %s924_s16 = scalar_lea.hbm %s1235_s1, 1280 }
   0x3   :  { %s28_s13 = sshll.u32 %s1018_s12, 4  ;;  %p925_p0 = scmp.ne.s32.totalorder %s1235_s1, %s924_s16  ;;  %s29_s13 = int_to_ptr.vmem [resolvable:$true] %s28_s13 }
   0x4   :  { %p928_p1 = scmp.lt.u32.totalorder %s924_s16, %s1235_s1 }
   0x6   :  { %p930_p2 = pnand %p928_p1, %p925_p0 }
   0x8   :  { %933 = shalt.err (!%p930_p2)
}
   0x9   :  { %s934_s21 = scalar_lea.vmem %s29_s13, 1280  ;;  %p939_p4 = scmp.lt.s32.totalorder %s29_s13, %s29_s13 }
   0xa   :  { %p935_p3 = scmp.ne.s32.totalorder %s29_s13, %s934_s21  ;;  %p940_p5 = scmp.lt.s32.totalorder %s934_s21, %s934_s21 }
   0xc   :  { %p941_p6 = por %p940_p5, %p939_p4 }
   0xe   :  { %p942_p7 = pnand %p941_p6, %p935_p3 }
  0x10   :  { %945 = shalt.err (!%p942_p7)
}
  0x11   :  { %s1019_s22 = smov 64   ;;  %s1020_s23 = smov 4  }
  0x12   :  { %34 = dma.hbm_to_vmem [thread:$0]  %s1235_s1, 1280, %s29_s13, [#allocation6], %s1019_s22, %s1019_s22, %s1020_s23  }
  0x13   :  { %s1021_s26 = smov [#allocation2]   ;;  %s946_s30 = scalar_lea.hbm %s1234_s0, 256 }
  0x14   :  { %s16_s27 = sshll.u32 %s1021_s26, 4  ;;  %p947_p8 = scmp.ne.s32.totalorder %s1234_s0, %s946_s30  ;;  %s17_s27 = int_to_ptr.vmem [resolvable:$true] %s16_s27 }
  0x15   :  { %p950_p9 = scmp.lt.u32.totalorder %s946_s30, %s1234_s0 }
  0x17   :  { %p952_p10 = pnand %p950_p9, %p947_p8 }
  0x19   :  { %955 = shalt.err (!%p952_p10)
}
  0x1a   :  { %s956_s8 = scalar_lea.vmem %s17_s27, 256  ;;  %p961_p12 = scmp.lt.s32.totalorder %s17_s27, %s17_s27 }
  0x1b   :  { %p957_p11 = scmp.ne.s32.totalorder %s17_s27, %s956_s8  ;;  %p962_p13 = scmp.lt.s32.totalorder %s956_s8, %s956_s8 }
  0x1d   :  { %p963_p0 = por %p962_p13, %p961_p12 }
  0x1f   :  { %p964_p1 = pnand %p963_p0, %p957_p11 }
  0x21   :  { %967 = shalt.err (!%p964_p1)
}
  0x22   :  { %s1022_s1 = smov 128   ;;  %s1023_s9 = smov 8  }
  0x23   :  { %22 = dma.hbm_to_vmem [thread:$0]  %s1234_s0, 256, %s17_s27, [#allocation3], %s1022_s1, %s1022_s1, %s1023_s9  }
  0x24   :  { %s1024_s12 = smov [#allocation7]   ;;  %s968_s16 = scalar_lea.hbm %s1236_s2, 2176 }
  0x25   :  { %s40_s13 = sshll.u32 %s1024_s12, 4  ;;  %p969_p2 = scmp.ne.s32.totalorder %s1236_s2, %s968_s16  ;;  %s41_s13 = int_to_ptr.vmem [resolvable:$true] %s40_s13 }
  0x26   :  { %p972_p3 = scmp.lt.u32.totalorder %s968_s16, %s1236_s2 }
  0x28   :  { %p974_p4 = pnand %p972_p3, %p969_p2 }
  0x2a   :  { %977 = shalt.err (!%p974_p4)
}
  0x2b   :  { %s978_s21 = scalar_lea.vmem %s41_s13, 2176  ;;  %p983_p6 = scmp.lt.s32.totalorder %s41_s13, %s41_s13 }
  0x2c   :  { %p979_p5 = scmp.ne.s32.totalorder %s41_s13, %s978_s21  ;;  %p984_p7 = scmp.lt.s32.totalorder %s978_s21, %s978_s21 }
  0x2e   :  { %p985_p8 = por %p984_p7, %p983_p6 }
  0x30   :  { %p986_p9 = pnand %p985_p8, %p979_p5 }
  0x32   :  { %989 = shalt.err (!%p986_p9)
}
  0x33   :  { %46 = dma.hbm_to_vmem [thread:$0]  %s1236_s2, 2176, %s41_s13, [#allocation6], %s1022_s1, %s1022_s1, %s1023_s9  }
  0x34   :  { %1012 = dma.done.wait [#allocation3], 256  }
  0x35   :  { %1013 = vsyncadd [#allocation3], 4294967040 }
  0x36   :  { %1014 = dma.done.wait [#allocation6], 3456  }
  0x37   :  { %1015 = vsyncadd [#allocation6], 4294963840  ;;  %v1025_v0 = vmov 0.0   ;;  %vm1026_vm0 = vmmov 0   ;;  %v870_v1 = vld [vmem:[#allocation5] sm:$0xff]   ;;  %v871_v2 = vld [vmem:[#allocation5 + $0x8] sm:$0xff]   ;;  %v138_v6 = vlaneseq }
  0x38   :  { %802 = vmatprep.subr.bf16.mxu0 %v1025_v0  ;;  %806 = vmatprep.mubr.msk.bf16.mxu0 %vm1026_vm0, %v1025_v0  ;;  %v1096_v3 = vld [vmem:[#allocation2] sm:$0xff]  ;;  %v1098_v4 = vld [vmem:[#allocation2 + $0x8] sm:$0xff]  ;;  %vm93_vm1 = vcmask 261120   ;;  %v1112_v15 = vld [vmem:[#allocation7 + $0x18] sm:$0xff]  ;;  %s1027_s2 = smov 96   ;;  %vm240_vm2 = vcmask 130048  }
  0x39   :  { %803 = vmatpush3.bf16.msra.mxu0 %v870_v1  ;;  %v80_v5 = vpack.c.bf16 %v1098_v4, %v1096_v3  ;;  %v1104_v7 = vshrl.u32 %v138_v6, 7  ;;  %v1107_v9 = vld [vmem:[#allocation7] sm:$0xff]  ;;  %v1110_v14 = vld [vmem:[#allocation7 + $0x8] sm:$0xff]  ;;  %v1116_v18 = vld [vmem:[#allocation7 + $0x10] sm:$0xff]  ;;  %vm645_vm3 = vcmask 523264  }
  0x3a   :  { %804 = vmatprep.subr.bf16.mxu0 %v1025_v0  ;;  %v1114_v16 = vld [vmem:[#allocation7 + $0x28] sm:$0xff]  ;;  %v1118_v19 = vld [vmem:[#allocation7 + $0x20] sm:$0xff]  ;;  %v1120_v20 = vld [vmem:[#allocation7 + $0x30] sm:$0xff] }
  0x3b   :  { %v140_v8 = vsub.s32 0, %v1104_v7  ;;  %v1122_v23 = vld [vmem:[#allocation7 + $0x38] sm:$0xff]  ;;  %v1124_v24 = vld [vmem:[#allocation7 + $0x40] sm:$0xff]  ;;  %v68_v41 = vld [vmem:[#allocation7 + $0x48] sm:$0xff] }
  0x3c   :  { %v70_v40 = vld [vmem:[#allocation7 + $0x58] sm:$0xff]  ;;  %v71_v43 = vld [vmem:[#allocation7 + $0x60] sm:$0xff]  ;;  %v69_v51 = vld [vmem:[#allocation7 + $0x50] sm:$0xff] }
  0x3d   :  { %805 = vmatpush3.bf16.msra.mxu0 %v871_v2  ;;  %v141_v10 = vrot.slane %v1107_v9, %v140_v8  ;;  %v74_v55 = vld [vmem:[#allocation7 + $0x78] sm:$0xff]  ;;  %v72_v62 = vld [vmem:[#allocation7 + $0x68] sm:$0xff]  ;;  %v73_v2 = vld [vmem:[#allocation7 + $0x70] sm:$0xff] }
  0x3e   :  { %v75_v8 = vld [vmem:[#allocation7 + $0x80] sm:$0xff] }
  0x40   :  { %807 = vmatmul.mubr.msk.bf16.vlgmr.msra.gmra.mrb[0].mxu0 %vm93_vm1, %v80_v5 }
 0x113   :  { %v131_v11 = vpop.f32.mrb[0].mxu0 }
 0x114   :  { %v142_v12 = vadd.f32 %v141_v10, %v131_v11  ;;  %v808_v13 = vpop.f32.mrb[1].mxu0 }
 0x115   :  { %v134_v17 = vpop.f32.mrb[2].mxu0 }
 0x116   :  { %v143_v21 = vadd.f32 %v141_v10, %v134_v17  ;;  %v809_v22 = vpop.f32.mrb[3].mxu0  ;;  %v144_v25 = vmul.f32 %v142_v12, %v1110_v14  ;;  %v146_v26 = vmul.f32 %v142_v12, %v1112_v15  ;;  %v148_v27 = vmul.f32 %v142_v12, %v1114_v16 }
 0x117   :  { %v150_v32 = vmul.f32 %v142_v12, %v1122_v23 }
 0x118   :  { %v1129_v28 = vpack.c.bf16 %v143_v21, %v142_v12  ;;  %v145_v29 = vmul.f32 %v143_v21, %v1116_v18  ;;  %v147_v30 = vmul.f32 %v143_v21, %v1118_v19  ;;  %v149_v31 = vmul.f32 %v143_v21, %v1120_v20 }
 0x119   :  { %v151_v33 = vmul.f32 %v143_v21, %v1124_v24 }
 0x11a   :  { %158 = vrot.lane.b32.xlu0 %v1129_v28, %s1027_s2  ;;  %v152_v34 = vpack.c.bf16 %v145_v29, %v144_v25  ;;  %v153_v35 = vpack.c.bf16 %v147_v30, %v146_v26  ;;  %v154_v36 = vpack.c.bf16 %v149_v31, %v148_v27 }
 0x11b   :  { %v155_v37 = vpack.c.bf16 %v151_v33, %v150_v32 }
 0x11c   :  { %812 = vmatprep.mubr.msk.bf16.mxu1 %vm93_vm1, %v152_v34 }
 0x18c   :  { %v159_v38 = vpop.permute.xlu0 %158 }
 0x18d   :  { %858 = vmatprep.subr.msk.bf16.mxu1 %vm93_vm1, %v159_v38  ;;  %v173_v39 = vsel %vm93_vm1, %v159_v38, 0 }
 0x18e   :  { %811 = vmatpush3.bf16.xpose.msra.mxu1 %v173_v39 }
 0x18f   :  { %830 = vmatprep.subr.bf16.mxu1 %v1025_v0 }
 0x195   :  { %813 = vmatmul.mubr.msk.bf16.vlgmr.msra.gmra.mrb[0].mxu1 %vm93_vm1, %v153_v35 }
 0x196   :  { %816 = vmatprep.mubr.msk.bf16.mxu1 %vm93_vm1, %v154_v36 }
 0x19d   :  { %817 = vmatmul.mubr.msk.bf16.gmra.mrb[4].mxu1 %vm93_vm1, %v155_v37 }
 0x19e   :  { %834 = vmatprep.mubr.msk.bf16.mxu1 %vm1026_vm0, %v1025_v0 }
 0x268   :  { %v814_v42 = vpop.f32.mrb[0].mxu1 }
 0x269   :  { %v218_v44 = vadd.f32 %v814_v42, %v70_v40  ;;  %v209_v45 = vpop.f32.mrb[1].mxu1 }
 0x26a   :  { %v210_v46 = vadd.f32 %v209_v45, %v68_v41  ;;  %v815_v47 = vpop.f32.mrb[2].mxu1 }
 0x26b   :  { %v221_v48 = vadd.f32 %v815_v47, %v71_v43  ;;  %v212_v49 = vpop.f32.mrb[3].mxu1  ;;  %v247_v50 = vsel %vm240_vm2, %v218_v44, -inf }
 0x26c   :  { %248 = vmax.xlane.f32.xlu1 %v247_v50  ;;  %v241_v52 = vsel %vm240_vm2, %v210_v46, -inf  ;;  %v213_v53 = vadd.f32 %v212_v49, %v69_v51 }
 0x26d   :  { %242 = vmax.xlane.f32.xlu0 %v241_v52  ;;  %v250_v54 = vsel %vm240_vm2, %v221_v48, -inf }
 0x26e   :  { %v244_v61 = vsel %vm240_vm2, %v213_v53, -inf }
 0x270   :  { %251 = vmax.xlane.f32.xlu1 %v250_v54  ;;  %v818_v56 = vpop.f32.mrb[4].mxu1 }
 0x271   :  { %v225_v57 = vpop.f32.mrb[5].mxu1  ;;  %v234_v59 = vadd.f32 %v818_v56, %v74_v55 }
 0x272   :  { %v819_v58 = vpop.f32.mrb[6].mxu1  ;;  %v226_v63 = vadd.f32 %v225_v57, %v72_v62 }
 0x273   :  { %v228_v60 = vpop.f32.mrb[7].mxu1  ;;  %v259_v1 = vsel %vm240_vm2, %v234_v59, -inf  ;;  %v237_v10 = vadd.f32 %v819_v58, %v75_v8 }
 0x274   :  { %245 = vmax.xlane.f32.xlu1 %v244_v61  ;;  %v229_v5 = vadd.f32 %v228_v60, %v73_v2  ;;  %v253_v6 = vsel %vm240_vm2, %v226_v63, -inf }
 0x275   :  { %v262_v12 = vsel %vm240_vm2, %v237_v10, -inf }
 0x276   :  { %v256_v11 = vsel %vm240_vm2, %v229_v5, -inf }
 0x278   :  { %260 = vmax.xlane.f32.xlu1 %v259_v1 }
 0x27c   :  { %254 = vmax.xlane.f32.xlu1 %v253_v6 }
 0x280   :  { %257 = vmax.xlane.f32.xlu1 %v256_v11 }
 0x284   :  { %263 = vmax.xlane.f32.xlu1 %v262_v12 }
 0x2f9   :  { %v249_v13 = vpop.xlane.xlu1 %248 }
 0x2fa   :  { %v267_v17 = vsub.f32 %v218_v44, %v249_v13  ;;  %v243_v21 = vpop.xlane.xlu0 %242 }
 0x2fb   :  { %v265_v22 = vsub.f32 %v210_v46, %v243_v21 }
 0x2fc   :  { %v277_v25 = vmul.f32 1.442695, %v267_v17 }
 0x2fd   :  { %v273_v26 = vmul.f32 1.442695, %v265_v22  ;;  %v252_v27 = vpop.xlane.xlu1 %251 }
 0x2fe   :  { %880 = vpow2.f32 %v277_v25  ;;  %v268_v29 = vsub.f32 %v221_v48, %v252_v27 }
 0x2ff   :  { %882 = vpow2.f32 %v273_v26 }
 0x300   :  { %v279_v32 = vmul.f32 1.442695, %v268_v29 }
 0x301   :  { %v246_v30 = vpop.xlane.xlu1 %245 }
 0x302   :  { %v266_v31 = vsub.f32 %v213_v53, %v246_v30 }
 0x304   :  { %v275_v33 = vmul.f32 1.442695, %v266_v31 }
 0x305   :  { %v261_v34 = vpop.xlane.xlu1 %260 }
 0x306   :  { %884 = vpow2.f32 %v275_v33  ;;  %v271_v35 = vsub.f32 %v234_v59, %v261_v34 }
 0x307   :  { %886 = vpow2.f32 %v279_v32 }
 0x308   :  { %v1154_v36 = vpop.eup %880  ;;  %v285_v37 = vmul.f32 1.442695, %v271_v35 }
 0x309   :  { %v883_v38 = vpop.eup %882  ;;  %v255_v39 = vpop.xlane.xlu1 %254  ;;  %v295_v40 = vsel %vm240_vm2, %v1154_v36, 0.0 }
 0x30a   :  { %888 = vpow2.f32 %v285_v37  ;;  %v269_v41 = vsub.f32 %v226_v63, %v255_v39  ;;  %296 = vadd.xlane.f32.xlu0 %v295_v40  ;;  %v289_v42 = vsel %vm240_vm2, %v883_v38, 0.0  ;;  %v872_v40 = vld [vmem:[#allocation5 + $0x10] sm:$0xff]  }
 0x30b   :  { %290 = vadd.xlane.f32.xlu1 %v289_v42  ;;  %831 = vmatpush3.bf16.msra.mxu1 %v872_v40 }
 0x30c   :  { %v281_v43 = vmul.f32 1.442695, %v269_v41  ;;  %832 = vmatprep.subr.bf16.mxu1 %v1025_v0  ;;  %v873_v41 = vld [vmem:[#allocation5 + $0x18] sm:$0xff]  }
 0x30d   :  { %v258_v44 = vpop.xlane.xlu1 %257 }
 0x30e   :  { %890 = vpow2.f32 %v281_v43  ;;  %v270_v45 = vsub.f32 %v229_v5, %v258_v44 }
 0x30f   :  { %833 = vmatpush3.bf16.msra.mxu1 %v873_v41 }
 0x310   :  { %v885_v46 = vpop.eup %884  ;;  %v283_v47 = vmul.f32 1.442695, %v270_v45  ;;  %846 = vmatprep.subr.bf16.mxu1 %v1025_v0 }
 0x311   :  { %v264_v48 = vpop.xlane.xlu1 %263  ;;  %v292_v49 = vsel %vm240_vm2, %v885_v46, 0.0  ;;  %v887_v50 = vpop.eup %886 }
 0x312   :  { %892 = vpow2.f32 %v283_v47  ;;  %v272_v51 = vsub.f32 %v237_v10, %v264_v48  ;;  %293 = vadd.xlane.f32.xlu1 %v292_v49  ;;  %v298_v55 = vsel %vm240_vm2, %v887_v50, 0.0 }
 0x314   :  { %v889_v52 = vpop.eup %888  ;;  %v287_v53 = vmul.f32 1.442695, %v272_v51 }
 0x315   :  { %v307_v54 = vsel %vm240_vm2, %v889_v52, 0.0 }
 0x316   :  { %894 = vpow2.f32 %v287_v53  ;;  %308 = vadd.xlane.f32.xlu0 %v307_v54  ;;  %299 = vadd.xlane.f32.xlu1 %v298_v55 }
 0x318   :  { %v891_v56 = vpop.eup %890 }
 0x319   :  { %v301_v57 = vsel %vm240_vm2, %v891_v56, 0.0 }
 0x31a   :  { %302 = vadd.xlane.f32.xlu0 %v301_v57 }
 0x31c   :  { %v893_v58 = vpop.eup %892 }
 0x31d   :  { %v304_v59 = vsel %vm240_vm2, %v893_v58, 0.0 }
 0x31e   :  { %305 = vadd.xlane.f32.xlu1 %v304_v59 }
 0x320   :  { %v895_v60 = vpop.eup %894 }
 0x321   :  { %v310_v61 = vsel %vm240_vm2, %v895_v60, 0.0 }
 0x322   :  { %311 = vadd.xlane.f32.xlu1 %v310_v61 }
 0x330   :  { %333 = vrot.lane.b32.xlu0 %v1129_v28, %s1019_s22  ;;  %s1028_s22 = smov [#allocation8]  }
 0x331   :  { %s743_s24 = sshll.u32 %s1028_s22, 4  ;;  %s744_s24 = int_to_ptr.vmem [resolvable:$true] %s743_s24 }
 0x332   :  { %s990_s25 = scalar_lea.vmem %s744_s24, 256  ;;  %p995_p11 = scmp.lt.s32.totalorder %s744_s24, %s744_s24 }
 0x333   :  { %p991_p10 = scmp.ne.s32.totalorder %s744_s24, %s990_s25  ;;  %p996_p12 = scmp.lt.s32.totalorder %s990_s25, %s990_s25 }
 0x335   :  { %p997_p13 = por %p996_p12, %p995_p11 }
 0x337   :  { %p998_p0 = pnand %p997_p13, %p991_p10 }
 0x397   :  { %v297_v63 = vpop.xlane.xlu0 %296 }
 0x398   :  { %v291_v62 = vpop.xlane.xlu1 %290 }
 0x399   :  { %896 = vrcp.f32 %v291_v62 }
 0x39f   :  { %v294_v1 = vpop.xlane.xlu1 %293 }
 0x3a0   :  { %898 = vrcp.f32 %v294_v1 }
 0x3a1   :  { %900 = vrcp.f32 %v297_v63 }
 0x3a3   :  { %v300_v2 = vpop.xlane.xlu1 %299  ;;  %v309_v5 = vpop.xlane.xlu0 %308 }
 0x3a4   :  { %902 = vrcp.f32 %v300_v2  ;;  %v897_v8 = vpop.eup %896 }
 0x3a5   :  { %v321_v13 = vmul.f32 %v897_v8, %v883_v38 }
 0x3a7   :  { %v303_v6 = vpop.xlane.xlu0 %302 }
 0x3a8   :  { %904 = vrcp.f32 %v303_v6 }
 0x3aa   :  { %v899_v10 = vpop.eup %898 }
 0x3ab   :  { %v306_v11 = vpop.xlane.xlu1 %305  ;;  %v334_v12 = vpop.permute.xlu0 %333  ;;  %v322_v17 = vmul.f32 %v899_v10, %v885_v46 }
 0x3ac   :  { %v901_v21 = vpop.eup %900  ;;  %906 = vrcp.f32 %v306_v11  ;;  %820 = vmatprep.subr.bf16.mxu0 %v334_v12 }
 0x3ad   :  { %821 = vmatpush3.bf16.msra.mxu0 %v334_v12  ;;  %v329_v28 = vpack.c.bf16 %v322_v17, %v321_v13  ;;  %908 = vrcp.f32 %v309_v5  ;;  %v323_v25 = vmul.f32 %v901_v21, %v1154_v36 }
 0x3ae   :  { %v903_v22 = vpop.eup %902  ;;  %838 = vmatprep.subr.bf16.mxu0 %v1025_v0 }
 0x3af   :  { %v324_v26 = vmul.f32 %v903_v22, %v887_v50  ;;  %822 = vmatprep.mubr.msk.bf16.mxu0 %vm240_vm2, %v329_v28  ;;  %v312_v27 = vpop.xlane.xlu1 %311 }
 0x3b0   :  { %910 = vrcp.f32 %v312_v27 }
 0x3b1   :  { %v330_v29 = vpack.c.bf16 %v324_v26, %v323_v25  ;;  %v874_v26 = vld [vmem:[#allocation5 + $0x20] sm:$0xff]  }
 0x3b2   :  { %v905_v30 = vpop.eup %904 }
 0x3b3   :  { %823 = vmatmul.mubr.msk.bf16.vlgmr.msra.gmra.mrb[4].mxu0 %vm240_vm2, %v330_v29  ;;  %v325_v32 = vmul.f32 %v905_v30, %v891_v56 }
 0x3b4   :  { %839 = vmatpush3.bf16.msra.mxu0 %v874_v26 }
 0x3b5   :  { %840 = vmatprep.subr.bf16.mxu0 %v1025_v0 }
 0x3b6   :  { %v907_v31 = vpop.eup %906 }
 0x3b7   :  { %v326_v33 = vmul.f32 %v907_v31, %v893_v58  ;;  %v909_v34 = vpop.eup %908 }
 0x3b8   :  { %v327_v38 = vmul.f32 %v909_v34, %v889_v52  ;;  %v525_v34 = vsub.s32 4, %v1104_v7 }
 0x3b9   :  { %v331_v35 = vpack.c.bf16 %v326_v33, %v325_v32 }
 0x3ba   :  { %v911_v37 = vpop.eup %910 }
 0x3bb   :  { %826 = vmatprep.mubr.msk.bf16.mxu0 %vm240_vm2, %v331_v35  ;;  %v328_v39 = vmul.f32 %v911_v37, %v895_v60  ;;  %v526_v37 = vrot.slane %v1107_v9, %v525_v34 }
 0x3bd   :  { %v332_v36 = vpack.c.bf16 %v328_v39, %v327_v38  ;;  %v531_v38 = vsub.s32 5, %v1104_v7 }
 0x3bf   :  { %827 = vmatmul.mubr.msk.bf16.gmra.mrb[8].mxu0 %vm240_vm2, %v332_v36  ;;  %v532_v40 = vrot.slane %v1107_v9, %v531_v38  ;;  %v732_v38 = vsub.s32 7, %v1104_v7 }
 0x3c0   :  { %842 = vmatprep.mubr.msk.bf16.mxu0 %vm1026_vm0, %v1025_v0 }
 0x486   :  { %v824_v42 = vpop.f32.mrb[4].mxu0 }
 0x487   :  { %v415_v43 = vmul.f32 %v824_v42, %v1112_v15  ;;  %v382_v44 = vpop.f32.mrb[5].mxu0 }
 0x488   :  { %v413_v45 = vmul.f32 %v382_v44, %v1110_v14  ;;  %v825_v46 = vpop.f32.mrb[6].mxu0 }
 0x489   :  { %v416_v47 = vmul.f32 %v825_v46, %v1118_v19  ;;  %v385_v48 = vpop.f32.mrb[7].mxu0 }
 0x48a   :  { %v421_v49 = vadd.f32 %v415_v43, %v413_v45  ;;  %v414_v50 = vmul.f32 %v385_v48, %v1116_v18  ;;  %v877_v48 = vld [vmem:[#allocation5 + $0x38] sm:$0xff]  }
 0x48c   :  { %v422_v51 = vadd.f32 %v416_v47, %v414_v50  ;;  %v876_v47 = vld [vmem:[#allocation5 + $0x30] sm:$0xff]   ;;  %v879_v50 = vld [vmem:[#allocation5 + $0x48] sm:$0xff]  }
 0x492   :  { %v828_v52 = vpop.f32.mrb[8].mxu0 }
 0x493   :  { %v398_v53 = vpop.f32.mrb[9].mxu0  ;;  %v419_v57 = vmul.f32 %v828_v52, %v1122_v23 }
 0x494   :  { %v417_v54 = vmul.f32 %v398_v53, %v1114_v16  ;;  %v829_v55 = vpop.f32.mrb[10].mxu0  ;;  %v490_v16 = vsub.s32 1, %v1104_v7 }
 0x495   :  { %v401_v56 = vpop.f32.mrb[11].mxu0  ;;  %v420_v59 = vmul.f32 %v829_v55, %v1124_v24 }
 0x496   :  { %v423_v15 = vadd.f32 %v421_v49, %v417_v54  ;;  %v418_v58 = vmul.f32 %v401_v56, %v1120_v20  ;;  %v491_v18 = vrot.slane %v1107_v9, %v490_v16  ;;  %v878_v49 = vld [vmem:[#allocation5 + $0x40] sm:$0xff]  }
 0x498   :  { %v425_v14 = vadd.f32 %v423_v15, %v419_v57  ;;  %v424_v19 = vadd.f32 %v422_v51, %v418_v58  ;;  %v598_v51 = vsub.s32 2, %v1104_v7 }
 0x49a   :  { %v426_v60 = vadd.f32 %v424_v19, %v420_v59  ;;  %v599_v52 = vrot.slane %v1107_v9, %v598_v51 }
 0x49c   :  { %v431_v61 = vpack.c.bf16 %v426_v60, %v425_v14 }
 0x49e   :  { %835 = vmatmul.mubr.msk.bf16.vlgmr.msra.gmra.mrb[8].mxu1 %vm93_vm1, %v431_v61 }
 0x49f   :  { %854 = vmatprep.mubr.msk.bf16.mxu1 %vm1026_vm0, %v1025_v0  ;;  %847 = vmatpush3.bf16.msra.mxu1 %v876_v47 }
 0x4a0   :  { %848 = vmatprep.subr.bf16.mxu1 %v1025_v0 }
 0x4a3   :  { %849 = vmatpush3.bf16.msra.mxu1 %v877_v48 }
 0x4a4   :  { %850 = vmatprep.subr.bf16.mxu1 %v1025_v0 }
 0x4a7   :  { %851 = vmatpush3.bf16.msra.mxu1 %v878_v49 }
 0x4a8   :  { %852 = vmatprep.subr.bf16.mxu1 %v1025_v0 }
 0x4ab   :  { %853 = vmatpush3.bf16.msra.mxu1 %v879_v50 }
 0x571   :  { %v481_v62 = vpop.f32.mrb[8].mxu1 }
 0x572   :  { %v492_v23 = vadd.f32 %v491_v18, %v481_v62  ;;  %v836_v63 = vpop.f32.mrb[9].mxu1 }
 0x573   :  { %v484_v1 = vpop.f32.mrb[10].mxu1  ;;  %v692_v63 = vsub.s32 3, %v1104_v7 }
 0x574   :  { %v493_v20 = vadd.f32 %v491_v18, %v484_v1  ;;  %v837_v2 = vpop.f32.mrb[11].mxu1  ;;  %v494_v24 = vadd.f32 %v492_v23, %v1096_v3 }
 0x575   :  { %v693_v1 = vrot.slane %v1107_v9, %v692_v63 }
 0x576   :  { %v496_v5 = vsel %vm93_vm1, %v494_v24, 0.0  ;;  %v495_v6 = vadd.f32 %v493_v20, %v1098_v4  ;;  %v875_v4 = vld [vmem:[#allocation5 + $0x28] sm:$0xff]  }
 0x577   :  { %497 = vadd.xlane.f32.xlu1 %v496_v5  ;;  %841 = vmatpush3.bf16.msra.mxu0 %v875_v4 }
 0x578   :  { %v499_v8 = vsel %vm93_vm1, %v495_v6, 0.0 }
 0x57b   :  { %500 = vadd.xlane.f32.xlu1 %v499_v8 }
 0x604   :  { %v498_v10 = vpop.xlane.xlu1 %497 }
 0x605   :  { %v503_v11 = vmul.f32 0.03125, %v498_v10 }
 0x607   :  { %v505_v12 = vsub.f32 %v494_v24, %v503_v11 }
 0x608   :  { %v501_v13 = vpop.xlane.xlu1 %500 }
 0x609   :  { %v504_v17 = vmul.f32 0.03125, %v501_v13  ;;  %v507_v21 = vmul.f32 %v505_v12, %v505_v12 }
 0x60b   :  { %v506_v28 = vsub.f32 %v495_v6, %v504_v17  ;;  %v509_v22 = vsel %vm93_vm1, %v507_v21, 0.0 }
 0x60c   :  { %510 = vadd.xlane.f32.xlu1 %v509_v22 }
 0x60d   :  { %v508_v25 = vmul.f32 %v506_v28, %v506_v28 }
 0x60f   :  { %v512_v3 = vsel %vm93_vm1, %v508_v25, 0.0 }
 0x610   :  { %513 = vadd.xlane.f32.xlu1 %v512_v3 }
 0x699   :  { %v511_v27 = vpop.xlane.xlu1 %510 }
 0x69a   :  { %v515_v29 = vmul.f32 0.03125, %v511_v27 }
 0x69c   :  { %v517_v30 = vadd.f32 1e-05, %v515_v29 }
 0x69d   :  { %v514_v31 = vpop.xlane.xlu1 %513 }
 0x69e   :  { %912 = vrsqrt.f32 %v517_v30  ;;  %v516_v32 = vmul.f32 0.03125, %v514_v31 }
 0x6a0   :  { %v518_v33 = vadd.f32 1e-05, %v516_v32 }
 0x6a2   :  { %914 = vrsqrt.f32 %v518_v33 }
 0x6a8   :  { %v913_v35 = vpop.eup %912 }
 0x6a9   :  { %v521_v39 = vmul.f32 %v913_v35, %v505_v12 }
 0x6ab   :  { %v527_v41 = vmul.f32 %v526_v37, %v521_v39 }
 0x6ac   :  { %v915_v36 = vpop.eup %914 }
 0x6ad   :  { %v522_v42 = vmul.f32 %v915_v36, %v506_v28  ;;  %v533_v44 = vadd.f32 %v532_v40, %v527_v41  ;;  %v733_v41 = vrot.slane %v1107_v9, %v732_v38 }
 0x6af   :  { %v528_v43 = vmul.f32 %v526_v37, %v522_v42  ;;  %v726_v37 = vsub.s32 6, %v1104_v7 }
 0x6b1   :  { %v534_v45 = vadd.f32 %v532_v40, %v528_v43  ;;  %v727_v39 = vrot.slane %v1107_v9, %v726_v37 }
 0x6b3   :  { %v539_v46 = vpack.c.bf16 %v534_v45, %v533_v44 }
 0x6b5   :  { %843 = vmatmul.mubr.msk.bf16.vlgmr.msra.gmra.mrb[12].mxu0 %vm93_vm1, %v539_v46 }
 0x788   :  { %v589_v53 = vpop.f32.mrb[12].mxu0 }
 0x789   :  { %v600_v54 = vadd.f32 %v599_v52, %v589_v53  ;;  %v844_v55 = vpop.f32.mrb[13].mxu0 }
 0x78a   :  { %v592_v56 = vpop.f32.mrb[14].mxu0 }
 0x78b   :  { %v604_v57 = vmul.f32 0.70710677, %v600_v54  ;;  %v601_v15 = vadd.f32 %v599_v52, %v592_v56  ;;  %v845_v58 = vpop.f32.mrb[15].mxu0  ;;  %v602_v0 = vmul.f32 0.5, %v600_v54 }
 0x78d   :  { %916 = verf.f32 %v604_v57  ;;  %v605_v14 = vmul.f32 0.70710677, %v601_v15  ;;  %v603_v61 = vmul.f32 0.5, %v601_v15 }
 0x78f   :  { %918 = verf.f32 %v605_v14 }
 0x797   :  { %v917_v59 = vpop.eup %916 }
 0x798   :  { %v608_v19 = vadd.f32 1.0, %v917_v59 }
 0x799   :  { %v919_v60 = vpop.eup %918 }
 0x79a   :  { %v609_v16 = vadd.f32 1.0, %v919_v60  ;;  %v610_v18 = vmul.f32 %v608_v19, %v602_v0 }
 0x79c   :  { %v611_v62 = vmul.f32 %v609_v16, %v603_v61 }
 0x79e   :  { %v620_v23 = vpack.c.bf16 %v611_v62, %v610_v18 }
 0x7a0   :  { %855 = vmatmul.mubr.msk.bf16.vlgmr.msra.gmra.mrb[12].mxu1 %vm645_vm3, %v620_v23 }
 0x873   :  { %v683_v20 = vpop.f32.mrb[12].mxu1 }
 0x874   :  { %v694_v2 = vadd.f32 %v693_v1, %v683_v20  ;;  %v856_v24 = vpop.f32.mrb[13].mxu1 }
 0x875   :  { %v686_v5 = vpop.f32.mrb[14].mxu1 }
 0x876   :  { %v695_v6 = vadd.f32 %v693_v1, %v686_v5  ;;  %v857_v8 = vpop.f32.mrb[15].mxu1  ;;  %v696_v10 = vadd.f32 %v694_v2, %v533_v44 }
 0x878   :  { %v698_v11 = vsel %vm93_vm1, %v696_v10, 0.0  ;;  %v697_v12 = vadd.f32 %v695_v6, %v534_v45 }
 0x879   :  { %699 = vadd.xlane.f32.xlu1 %v698_v11 }
 0x87a   :  { %v701_v13 = vsel %vm93_vm1, %v697_v12, 0.0 }
 0x87d   :  { %702 = vadd.xlane.f32.xlu1 %v701_v13 }
 0x906   :  { %v700_v17 = vpop.xlane.xlu1 %699 }
 0x907   :  { %v704_v21 = vmul.f32 0.03125, %v700_v17 }
 0x909   :  { %v706_v28 = vsub.f32 %v696_v10, %v704_v21 }
 0x90a   :  { %v703_v22 = vpop.xlane.xlu1 %702 }
 0x90b   :  { %v705_v25 = vmul.f32 0.03125, %v703_v22  ;;  %v708_v3 = vmul.f32 %v706_v28, %v706_v28 }
 0x90d   :  { %v707_v26 = vsub.f32 %v697_v12, %v705_v25  ;;  %v710_v4 = vsel %vm93_vm1, %v708_v3, 0.0 }
 0x90e   :  { %711 = vadd.xlane.f32.xlu0 %v710_v4 }
 0x90f   :  { %v709_v27 = vmul.f32 %v707_v26, %v707_v26 }
 0x911   :  { %v713_v29 = vsel %vm93_vm1, %v709_v27, 0.0 }
 0x912   :  { %714 = vadd.xlane.f32.xlu1 %v713_v29 }
 0x99b   :  { %v712_v30 = vpop.xlane.xlu0 %711 }
 0x99c   :  { %v716_v31 = vmul.f32 0.03125, %v712_v30 }
 0x99e   :  { %v718_v32 = vadd.f32 1e-05, %v716_v31 }
 0x99f   :  { %v715_v33 = vpop.xlane.xlu1 %714 }
 0x9a0   :  { %920 = vrsqrt.f32 %v718_v32  ;;  %v717_v34 = vmul.f32 0.03125, %v715_v33 }
 0x9a2   :  { %v719_v35 = vadd.f32 1e-05, %v717_v34 }
 0x9a4   :  { %922 = vrsqrt.f32 %v719_v35 }
 0x9aa   :  { %v921_v36 = vpop.eup %920 }
 0x9ab   :  { %v722_v40 = vmul.f32 %v921_v36, %v706_v28 }
 0x9ad   :  { %v728_v42 = vmul.f32 %v727_v39, %v722_v40 }
 0x9ae   :  { %v923_v43 = vpop.eup %922 }
 0x9af   :  { %v723_v44 = vmul.f32 %v923_v43, %v707_v26  ;;  %v734_v45 = vadd.f32 %v733_v41, %v728_v42 }
 0x9b1   :  { %v729_v46 = vmul.f32 %v727_v39, %v723_v44  ;;  %736 = vst.msk [vmem:[#allocation8] sm:$0xff] %vm93_vm1, %v734_v45 }
 0x9b3   :  { %v735_v47 = vadd.f32 %v733_v41, %v729_v46 }
 0x9b5   :  { %737 = vst.msk [vmem:[#allocation8 + $0x8] sm:$0xff] %vm93_vm1, %v735_v47 }
 0x9b6   :  { %1001 = shalt.err (!%p998_p0)
}
 0x9b7   :  { %s1002_s28 = scalar_lea.hbm %s1237_s3, 256 }
 0x9b8   :  { %p1003_p1 = scmp.ne.s32.totalorder %s1237_s3, %s1002_s28  ;;  %p1006_p2 = scmp.lt.u32.totalorder %s1002_s28, %s1237_s3 }
 0x9ba   :  { %p1008_p3 = pnand %p1006_p2, %p1003_p1 }
 0x9bc   :  { %1011 = shalt.err (!%p1008_p3)
}
 0x9bd   :  { %749 = dma.vmem_to_hbm [thread:$0]  %s744_s24, 256, %s1237_s3, [#allocation4], %s1022_s1, %s1022_s1, %s1023_s9  }
 0x9be   :  { %1016 = dma.done.wait [#allocation4], 256  }
 0x9bf   :  { %1017 = vsyncadd [#allocation4], 4294967040 }
 0x9c0   :  { %753 = vsyncpa [#allocation3], 1 }
 0x9c1   :  { %754 = vsyncpa [#allocation6], 1 }
 0x9c2   :  { %755 = vsyncpa [#allocation4], 1 }

</bundles_post_ra>
